<compile_context>
chip_gen: v5e
topology: v5e:2x2
jax: 0.10.0
libtpu: 0.0.40
codegen_flags: <defaults>
</compile_context>

<pallas_src>
import functools

import jax
import jax.numpy as jnp
from jax.experimental import pallas as pl
from jax.experimental.pallas import tpu as pltpu


def _round_up(x: int, m: int) -> int:
    return (x + m - 1) // m * m


def _chip_config():
    """Per-generation tuning knobs derived from the default device."""
    kind = getattr(jax.devices()[0], "device_kind", "").lower()
    if "v7" in kind:
        # 64 MiB physical VMEM per TensorCore, 2 TCs: tight budget, even >=4 tiles.
        return dict(budget=38 << 20, cap=54 << 20, prefer_256=True, min_tiles=4)
    if "v6" in kind:
        return dict(budget=88 << 20, cap=100 << 20, prefer_256=True, min_tiles=2)
    if "v5 lite" in kind or "v5e" in kind or "v5lite" in kind:
        return dict(budget=88 << 20, cap=100 << 20, prefer_256=False, min_tiles=2)
    # Unknown / older chips: conservative.
    return dict(budget=64 << 20, cap=80 << 20, prefer_256=False, min_tiles=2)


def _vmem_bytes_estimate(tm: int, hp: int, act_itemsize: int) -> int:
    """Rough per-core VMEM footprint of one (TM, Hp) row tile w/ layer streaming."""
    act_io = 2 * 2 * tm * hp * act_itemsize   # x + out tiles, double-buffered
    carry = tm * hp * 4                       # f32 carry scratch
    wts = 2 * hp * (2 * hp) * 2               # one layer of fused bf16 weights, 2 bufs
    bias = 2 * (2 * hp) * 4
    tmp = 6 * tm * hp * 4                     # live f32 temps: y(2 tiles) + g + t + x + bf16 copy
    return act_io + carry + wts + bias + tmp


def _highway_kernel(x_ref, w_ref, b_ref, o_ref, carry_ref, *, hidden):
    """One grid step = one highway layer applied to one (TM, Hp) row tile.

    x_ref    : (TM, Hp)      activations in HBM dtype (resident across layers)
    w_ref    : (1, Hp, 2Hp)  this layer's fused bf16 weights; [:, :, :Hp]=gate
    b_ref    : (1, 1, 2Hp)   this layer's fused f32 biases
    o_ref    : (TM, Hp)      output tile (written on the last layer only)
    carry_ref: (TM, Hp) f32  VMEM scratch carry across the layer grid axis
    """
    l = pl.program_id(1)

    @pl.when(l == 0)
    def _():
        carry_ref[...] = x_ref[...].astype(jnp.float32)

    x = carry_ref[...]
    # One fused MXU matmul per layer: bf16 x bf16 -> f32 accumulate.
    y = jnp.dot(x.astype(jnp.bfloat16), w_ref[0],
                preferred_element_type=jnp.float32)
    y = y + b_ref[0]
    # sigmoid(y) == 0.5*tanh(0.5*y)+0.5: one EUP transcendental instead of two.
    g = 0.5 * jnp.tanh(0.5 * y[:, :hidden]) + 0.5
    t = jnp.maximum(y[:, hidden:], 0.0)               # relu (VPU)
    # Highway combine (3 VALU ops): g*t + (1-g)*x == x + g*(t - x).
    x = x + g * (t - x)
    carry_ref[...] = x

    @pl.when(l == pl.num_programs(1) - 1)
    def _():
        o_ref[...] = x.astype(o_ref.dtype)


@functools.partial(jax.jit, static_argnames=("row_tile",))
def _highway_impl(x, wt, bt, wg, bg, *, row_tile=None):
    orig_shape = x.shape
    H = orig_shape[-1]
    L = wt.shape[0]
    act_dtype = x.dtype
    act_bytes = jnp.dtype(act_dtype).itemsize

    cfg = _chip_config()

    # --- lane padding: 128-aligned; 256-aligned on 256x256-MXU chips if cheap ---
    Hp = max(128, _round_up(H, 128))
    if cfg["prefer_256"] and Hp % 256 != 0:
        hp256 = max(256, _round_up(H, 256))
        if (hp256 - H) <= max(32, int(0.15 * H)):
            Hp = hp256

    x2 = x.reshape(-1, H)                    # keep HBM dtype = x.dtype
    M = x2.shape[0]

    # --- row-tile selection: ~512 rows, chip-aware VMEM budget, even split ---
    if row_tile is None:
        n_tiles = max(1, pl.cdiv(M, 512))
        n_tiles = max(n_tiles, min(cfg["min_tiles"], max(1, M // 8)))
        if n_tiles > 1 and n_tiles % 2:
            n_tiles += 1                      # even step count balances 2 TCs
        TM = max(8, _round_up(pl.cdiv(M, n_tiles), 8))
        while TM > 8 and _vmem_bytes_estimate(TM, Hp, act_bytes) > cfg["budget"]:
            TM = max(8, _round_up(TM // 2, 8))
        # Prefer a divisor of M (still a multiple of 8) to skip row padding.
        if M % TM != 0 and M % 8 == 0:
            for cand in range(TM, TM // 2, -8):
                if M % cand == 0:
                    TM = cand
                    break
    else:
        TM = int(row_tile)
    Mp = _round_up(M, TM)

    # --- pad activations only when needed ---
    if (Mp, Hp) != (M, H):
        x2 = jnp.pad(x2, ((0, Mp - M), (0, Hp - H)))

    # --- fuse + pad + cast params: one (Hp, 2Hp) bf16 matmul per layer ---
    if Hp != H:
        pad_w = ((0, 0), (0, Hp - H), (0, Hp - H))
        pad_b = ((0, 0), (0, Hp - H))
        wg_p, wt_p = jnp.pad(wg, pad_w), jnp.pad(wt, pad_w)
        bg_p, bt_p = jnp.pad(bg, pad_b), jnp.pad(bt, pad_b)
    else:
        wg_p, wt_p, bg_p, bt_p = wg, wt, bg, bt
    w_cat = jnp.concatenate([wg_p, wt_p], axis=-1).astype(jnp.bfloat16)   # (L, Hp, 2Hp)
    b_cat = jnp.concatenate([bg_p, bt_p], axis=-1).astype(jnp.float32)    # (L, 2Hp)
    b_cat = b_cat[:, None, :]                                             # (L, 1, 2Hp)

    est = _vmem_bytes_estimate(TM, Hp, act_bytes)
    vmem_limit = int(min(cfg["cap"], max(32 << 20, est + (8 << 20))))

    grid = (Mp // TM, L)
    kernel = functools.partial(_highway_kernel, hidden=Hp)

    out2 = pl.pallas_call(
        kernel,
        out_shape=jax.ShapeDtypeStruct((Mp, Hp), act_dtype),
        grid_spec=pltpu.PrefetchScalarGridSpec(
            num_scalar_prefetch=0,
            grid=grid,
            in_specs=[
                # Row tile of activations; block index invariant across the
                # layer axis -> DMA'd once per row tile, resident across layers.
                pl.BlockSpec((TM, Hp), lambda i, l: (i, 0)),
                # One layer of fused weights / biases per grid step (streamed;
                # double-buffering overlaps layer l+1 DMA with layer l compute).
                pl.BlockSpec((1, Hp, 2 * Hp), lambda i, l: (l, 0, 0)),
                pl.BlockSpec((1, 1, 2 * Hp), lambda i, l: (l, 0, 0)),
            ],
            out_specs=pl.BlockSpec((TM, Hp), lambda i, l: (i, 0)),
            scratch_shapes=[pltpu.VMEM((TM, Hp), jnp.float32)],   # f32 carry
        ),
        compiler_params=pltpu.CompilerParams(
            dimension_semantics=("parallel", "arbitrary"),
            vmem_limit_bytes=vmem_limit,
        ),
        input_output_aliases={0: 0},   # reuse the padded x slab as the output buffer
    )(x2, w_cat, b_cat)

    if (Mp, Hp) != (M, H):
        out2 = out2[:M, :H]
    return out2.reshape(orig_shape)


def highway_encoder(x, wt, bt, wg, bg, *, row_tile=None):
    """Apply the highway encoder.

    x : (..., H)   input activations (any leading dims)
    wt: (L, H, H)  transform weights, pre-transposed so y = x @ wt[l] + bt[l]
    bt: (L, H)
    wg: (L, H, H)  gate weights (same layout)
    bg: (L, H)
    """
    if wt.shape[0] == 0:
        return x
    return _highway_impl(x, wt, bt, wg, bg, row_tile=row_tile)


def _reference(x, wt, bt, wg, bg):
    """Pure-JAX reference matching the PyTorch forward (same bf16-weight recipe)."""
    xf = x.astype(jnp.float32)
    wtb = wt.astype(jnp.bfloat16)
    wgb = wg.astype(jnp.bfloat16)
    for l in range(wt.shape[0]):
        g = jax.nn.sigmoid(
            jnp.dot(xf.astype(jnp.bfloat16), wgb[l],
                    preferred_element_type=jnp.float32) + bg[l])
        t = jax.nn.relu(
            jnp.dot(xf.astype(jnp.bfloat16), wtb[l],
                    preferred_element_type=jnp.float32) + bt[l])
        xf = g * t + (1.0 - g) * xf
    return xf.astype(x.dtype)


if __name__ == "__main__":
    key = jax.random.PRNGKey(0)

    num_layers = 2
    batch, seq, hidden = 2, 8, 32  # x: (batch, seq, hidden)

    k_x, k_wt, k_bt, k_wg, k_bg = jax.random.split(key, 5)

    # Deterministic init mimicking nn.Linear's uniform(-1/sqrt(H), 1/sqrt(H)).
    bound = 1.0 / jnp.sqrt(hidden)
    # Stored already transposed relative to PyTorch's (out, in): y = x @ W + b.
    wt = jax.random.uniform(k_wt, (num_layers, hidden, hidden),
                            jnp.float32, -bound, bound)
    bt = jax.random.uniform(k_bt, (num_layers, hidden),
                            jnp.float32, -bound, bound)
    wg = jax.random.uniform(k_wg, (num_layers, hidden, hidden),
                            jnp.float32, -bound, bound)
    bg = jax.random.uniform(k_bg, (num_layers, hidden),
                            jnp.float32, -bound, bound)

    x = jax.random.normal(k_x, (batch, seq, hidden), jnp.float32)

    # Reference computed first (kernel only aliases its own padded copy of x).
    ref = _reference(x, wt, bt, wg, bg)

    out = highway_encoder(x, wt, bt, wg, bg)
    out = jax.block_until_ready(out)

    assert out.shape == x.shape
    assert jnp.allclose(out, ref, atol=1e-3, rtol=1e-3), "mismatch vs reference"

    print("KERNEL_OK")
</pallas_src>

<mosaic_0001>
module attributes {stable_mosaic.version = 11 : i64} {
  func.func @_highway_kernel(%arg0: i32, %arg1: i32, %arg2: memref<8x128xf32, #tpu.memory_space<vmem>>, %arg3: memref<1x128x256xbf16, #tpu.memory_space<vmem>>, %arg4: memref<1x1x256xf32, #tpu.memory_space<vmem>>, %arg5: memref<8x128xf32, #tpu.memory_space<vmem>>, %arg6: memref<8x128xf32, #tpu.memory_space<vmem>>) attributes {dimension_semantics = [#tpu.dimension_semantics<parallel>, #tpu.dimension_semantics<arbitrary>], iteration_bounds = array<i64: 2, 2>, scalar_prefetch = 0 : i64, scratch_operands = 1 : i64, tpu.core_type = #tpu.core_type<tc>, window_params = [{transform_indices = @transform_0, window_bounds = array<i64: 8, 128>}, {transform_indices = @transform_1, window_bounds = array<i64: 1, 128, 256>}, {transform_indices = @transform_2, window_bounds = array<i64: 1, 1, 256>}, {transform_indices = @transform_3, window_bounds = array<i64: 8, 128>}]} {
    %c0_i32 = arith.constant 0 : i32
    %0 = arith.cmpi eq, %arg1, %c0_i32 : i32
    %1 = arith.extui %0 : i1 to i32
    %c0_i32_0 = arith.constant 0 : i32
    %2 = arith.cmpi ne, %1, %c0_i32_0 : i32
    scf.if %2 {
      %c0_15 = arith.constant 0 : index
      %c0_16 = arith.constant 0 : index
      %30 = vector.load %arg2[%c0_15, %c0_16] : memref<8x128xf32, #tpu.memory_space<vmem>>, vector<8x128xf32>
      %c0_17 = arith.constant 0 : index
      %c0_18 = arith.constant 0 : index
      %31 = vector.load %arg6[%c0_17, %c0_18] : memref<8x128xf32, #tpu.memory_space<vmem>>, vector<8x128xf32>
      tpu.vector_store %arg6[%c0_17, %c0_18], %30 {strides = array<i32>} : memref<8x128xf32, #tpu.memory_space<vmem>>, vector<8x128xf32>,
    } else {
    }
    %c0 = arith.constant 0 : index
    %c0_1 = arith.constant 0 : index
    %3 = vector.load %arg6[%c0, %c0_1] : memref<8x128xf32, #tpu.memory_space<vmem>>, vector<8x128xf32>
    %4 = arith.truncf %3 : vector<8x128xf32> to vector<8x128xbf16>
    %c0_2 = arith.constant 0 : index
    %c0_3 = arith.constant 0 : index
    %c0_4 = arith.constant 0 : index
    %5 = vector.load %arg3[%c0_2, %c0_3, %c0_4] : memref<1x128x256xbf16, #tpu.memory_space<vmem>>, vector<1x128x256xbf16>
    %6 = vector.shape_cast %5 : vector<1x128x256xbf16> to vector<128x256xbf16>
    %cst = arith.constant dense<0.000000e+00> : vector<8x256xf32>
    %7 = tpu.matmul %4, %6, %cst {dimension_numbers = #tpu.dot_dimension_numbers<[1], [0], [0], [1], [0, 0, 1, 1], [], []>} : vector<8x128xbf16>, vector<128x256xbf16>, vector<8x256xf32> -> vector<8x256xf32>
    %c0_5 = arith.constant 0 : index
    %c0_6 = arith.constant 0 : index
    %c0_7 = arith.constant 0 : index
    %8 = vector.load %arg4[%c0_5, %c0_6, %c0_7] : memref<1x1x256xf32, #tpu.memory_space<vmem>>, vector<1x1x256xf32>
    %9 = vector.shape_cast %8 : vector<1x1x256xf32> to vector<1x256xf32>
    %10 = vector.broadcast %9 : vector<1x256xf32> to vector<8x256xf32>
    %11 = arith.addf %7, %10 : vector<8x256xf32>
    %12 = vector.extract_strided_slice %11 {offsets = [0, 0], sizes = [8, 128], strides = [1, 1]} : vector<8x256xf32> to vector<8x128xf32>
    %cst_8 = arith.constant 5.000000e-01 : f32
    %13 = vector.broadcast %cst_8 : f32 to vector<8x128xf32>
    %14 = arith.mulf %13, %12 : vector<8x128xf32>
    %15 = math.tanh %14 : vector<8x128xf32>
    %cst_9 = arith.constant 5.000000e-01 : f32
    %16 = vector.broadcast %cst_9 : f32 to vector<8x128xf32>
    %17 = arith.mulf %16, %15 : vector<8x128xf32>
    %cst_10 = arith.constant 5.000000e-01 : f32
    %18 = vector.broadcast %cst_10 : f32 to vector<8x128xf32>
    %19 = arith.addf %17, %18 : vector<8x128xf32>
    %20 = vector.extract_strided_slice %11 {offsets = [0, 128], sizes = [8, 128], strides = [1, 1]} : vector<8x256xf32> to vector<8x128xf32>
    %cst_11 = arith.constant 0.000000e+00 : f32
    %21 = vector.broadcast %cst_11 : f32 to vector<8x128xf32>
    %22 = arith.maximumf %20, %21 : vector<8x128xf32>
    %23 = arith.subf %22, %3 : vector<8x128xf32>
    %24 = arith.mulf %19, %23 : vector<8x128xf32>
    %25 = arith.addf %3, %24 : vector<8x128xf32>
    %c0_12 = arith.constant 0 : index
    %c0_13 = arith.constant 0 : index
    %26 = vector.load %arg6[%c0_12, %c0_13] : memref<8x128xf32, #tpu.memory_space<vmem>>, vector<8x128xf32>
    tpu.vector_store %arg6[%c0_12, %c0_13], %25 {strides = array<i32>} : memref<8x128xf32, #tpu.memory_space<vmem>>, vector<8x128xf32>,
    %c1_i32 = arith.constant 1 : i32
    %27 = arith.cmpi eq, %arg1, %c1_i32 : i32
    %28 = arith.extui %27 : i1 to i32
    %c0_i32_14 = arith.constant 0 : i32
    %29 = arith.cmpi ne, %28, %c0_i32_14 : i32
    scf.if %29 {
      %c0_15 = arith.constant 0 : index
      %c0_16 = arith.constant 0 : index
      %30 = vector.load %arg5[%c0_15, %c0_16] : memref<8x128xf32, #tpu.memory_space<vmem>>, vector<8x128xf32>
      tpu.vector_store %arg5[%c0_15, %c0_16], %25 {strides = array<i32>} : memref<8x128xf32, #tpu.memory_space<vmem>>, vector<8x128xf32>,
    } else {
    }
    return
  }
  func.func @transform_0(%arg0: i32, %arg1: i32) -> (i32, i32) {
    %c0_i32 = arith.constant 0 : i32
    %c0_i32_0 = arith.constant 0 : i32
    return %arg0, %c0_i32 : i32, i32
  }
  func.func @transform_1(%arg0: i32, %arg1: i32) -> (i32, i32, i32) {
    %c0_i32 = arith.constant 0 : i32
    %c0_i32_0 = arith.constant 0 : i32
    %c0_i32_1 = arith.constant 0 : i32
    return %arg1, %c0_i32, %c0_i32_0 : i32, i32, i32
  }
  func.func @transform_2(%arg0: i32, %arg1: i32) -> (i32, i32, i32) {
    %c0_i32 = arith.constant 0 : i32
    %c0_i32_0 = arith.constant 0 : i32
    %c0_i32_1 = arith.constant 0 : i32
    return %arg1, %c0_i32, %c0_i32_0 : i32, i32, i32
  }
  func.func @transform_3(%arg0: i32, %arg1: i32) -> (i32, i32) {
    %c0_i32 = arith.constant 0 : i32
    %c0_i32_0 = arith.constant 0 : i32
    return %arg0, %c0_i32 : i32, i32
  }
}

</mosaic_0001>

<bundles_post_ra>
// kernel: _highway_impl.1
= control target key start
LH: loop header
LB: loop body
LE: loop exit
PB: predicated region body
PF: predicated region fallthrough
CT: control target
= control target key end

     0   :  { %s650_s12 = smov 0   ;;  %s652_s13 = smov 0   ;;  %s753_s0 = inlined_call_operand.vmem [shape: f32[16,128], index: 0, kind: input, shape index: {}, may-alias: {0,3}]   ;;  %s754_s1 = inlined_call_operand.vmem [shape: bf16[2,128,256], index: 1, kind: input, shape index: {}]   ;;  %s755_s2 = inlined_call_operand.vmem [shape: f32[2,1,256], index: 2, kind: input, shape index: {}]   ;;  %s756_s3 = inlined_call_operand.vmem [shape: f32[16,128], index: 3, kind: output, shape index: {}, may-alias: {0,3}]  }
   0x1   :  { %s654_s14 = smov 0   ;;  %s656_s15 = smov 0  }
   0x2   :  { %s658_s16 = smov 0  }
   0x3 LB: > { %s22_s17 = sadd.s32 1, %s620_s14  ;;  %s25_s18 = sadd.s32 1, %s624_s15  ;;  %s628_s16 = sphi %s658_s16, %s13_s16   ;;  %s624_s15 = sphi %s656_s15, %s760_s15   ;;  %s620_s14 = sphi %s654_s14, %s759_s14   ;;  %s616_s13 = sphi %s652_s13, %s758_s13   ;;  %s612_s12 = sphi %s650_s12, %s757_s12  }
   0x4   : > { %p23_p0 = scmp.ge.s32.totalorder %s22_s17, 2  ;;  %p457_p1 = scmp.ge.s32.totalorder %s628_s16, 1 }
   0x5   : > { %p167_p2 = scmp.lt.s32.totalorder %s628_s16, 5 }
   0x6   : > { %s762_s17 = smov (%p23_p0, %s22_s17), 0  ;;  %s764_s18 = smov (!%p23_p0, %s25_s18), %s624_s15 }
   0x7   : > { %p168_p3 = pnand %p457_p1, %p167_p2  ;;  %p27_p4 = scmp.ge.s32.totalorder %s764_s18, 2 }
   0x8   : > { %p198_p5 = scmp.lt.s32.totalorder (!%p168_p3), %s616_s13, 1  ;;  %p202_p6 = scmp.lt.s32.totalorder (!%p168_p3), %s612_s12, 1 }
   0x9   : > { %s766_s18 = smov (%p27_p4, %s764_s18), 0  ;;  %171 = sbr.rel (%p168_p3) target bundleno = 204 (0xcc), region = 32 }
   0xa   : > { %p463_p7 = scmp.ne.s32.totalorder (!%p168_p3), %s612_s12, 0 }
   0xe   : > { %s768_s13 = smov (!%p198_p5, %s616_s13), 1 }
   0xf   : > { %s203_s19 = scalar_select %p202_p6, %s612_s12, 1 }
  0x10   : > { %s458_s20 = sshll.u32 %s768_s13, 3  ;;  %218 = sbr.rel (%p463_p7) target bundleno = 23 (0x17), region = 36 }
  0x11   : > { %s201_s23 = scalar_lea.vmem %s753_s0, %s458_s20  ;;  %s531_s24 = sshll.u32 %s203_s19, 7 }
  0x12   : > { %s690_s27 = scalar_lea.vmem %s754_s1, %s531_s24  ;;  %s461_s28 = sshll.u32 %s203_s19, 1 }
  0x13   : > { %s695_s4 = scalar_lea.vmem %s755_s2, %s461_s28  ;;  %s700_s7 = scalar_lea.vmem %s756_s3, %s458_s20 }
  0x15   : > { %v219_v0 = vld [vmem:[%s201_s23] sm:$0xff] }
  0x16   : > { %220 = vst [vmem:[#allocation2] sm:$0xff] %v219_v0 }
  0x17 PF: > { %v522_v1 = vld [vmem:[%s690_s27 + $0x70] sm:$0xf]  ;;  %v547_v2 = vld [vmem:[%s690_s27 + $0x74] sm:$0xf0]  ;;  %v546_v3 = vld [vmem:[%s690_s27 + $0x74] sm:$0xf] }
  0x18   : > { %v523_v4 = vor.u32 %v547_v2, %v522_v1  ;;  %v524_v5 = vld [vmem:[%s690_s27 + $0x78] sm:$0xf0]  ;;  %v514_v6 = vld [vmem:[%s690_s27 + $0x60] sm:$0xf]  ;;  %v545_v7 = vld [vmem:[%s690_s27 + $0x64] sm:$0xf0] }
  0x19   : > { %v527_v8 = vor.u32 %v546_v3, %v524_v5  ;;  %v544_v9 = vld [vmem:[%s690_s27 + $0x64] sm:$0xf]  ;;  %v516_v10 = vld [vmem:[%s690_s27 + $0x68] sm:$0xf0]  ;;  %v515_v11 = vor.u32 %v545_v7, %v514_v6  ;;  %v506_v13 = vld [vmem:[%s690_s27 + $0x50] sm:$0xf] }
  0x1a   : > { %325 = vmatpush.bf16.msra.mxu0 %v523_v4  ;;  %v519_v12 = vor.u32 %v544_v9, %v516_v10  ;;  %v543_v14 = vld [vmem:[%s690_s27 + $0x54] sm:$0xf0]  ;;  %v542_v15 = vld [vmem:[%s690_s27 + $0x54] sm:$0xf]  ;;  %v508_v16 = vld [vmem:[%s690_s27 + $0x58] sm:$0xf0] }
  0x1b   : > { %338 = vmatpush.bf16.msra.mxu1 %v527_v8  ;;  %v507_v17 = vor.u32 %v543_v14, %v506_v13  ;;  %v511_v18 = vor.u32 %v542_v15, %v508_v16  ;;  %v498_v19 = vld [vmem:[%s690_s27 + $0x40] sm:$0xf]  ;;  %v541_v20 = vld [vmem:[%s690_s27 + $0x44] sm:$0xf0]  ;;  %v540_v21 = vld [vmem:[%s690_s27 + $0x44] sm:$0xf] }
  0x1c   : > { %v500_v22 = vld [vmem:[%s690_s27 + $0x48] sm:$0xf0]  ;;  %v499_v23 = vor.u32 %v541_v20, %v498_v19  ;;  %v490_v25 = vld [vmem:[%s690_s27 + $0x30] sm:$0xf]  ;;  %v539_v26 = vld [vmem:[%s690_s27 + $0x34] sm:$0xf0] }
  0x1d   : > { %v503_v24 = vor.u32 %v540_v21, %v500_v22  ;;  %v538_v27 = vld [vmem:[%s690_s27 + $0x34] sm:$0xf]  ;;  %v492_v28 = vld [vmem:[%s690_s27 + $0x38] sm:$0xf0]  ;;  %v491_v29 = vor.u32 %v539_v26, %v490_v25  ;;  %v482_v31 = vld [vmem:[%s690_s27 + $0x20] sm:$0xf] }
  0x1e   : > { %326 = vmatpush.bf16.msra.mxu0 %v515_v11  ;;  %v495_v30 = vor.u32 %v538_v27, %v492_v28  ;;  %v537_v32 = vld [vmem:[%s690_s27 + $0x24] sm:$0xf0]  ;;  %v536_v33 = vld [vmem:[%s690_s27 + $0x24] sm:$0xf]  ;;  %v484_v34 = vld [vmem:[%s690_s27 + $0x28] sm:$0xf0] }
  0x1f   : > { %339 = vmatpush.bf16.msra.mxu1 %v519_v12  ;;  %v483_v35 = vor.u32 %v537_v32, %v482_v31  ;;  %v487_v36 = vor.u32 %v536_v33, %v484_v34  ;;  %v474_v37 = vld [vmem:[%s690_s27 + $0x10] sm:$0xf]  ;;  %v535_v38 = vld [vmem:[%s690_s27 + $0x14] sm:$0xf0]  ;;  %v534_v39 = vld [vmem:[%s690_s27 + $0x14] sm:$0xf] }
  0x20   : > { %v476_v40 = vld [vmem:[%s690_s27 + $0x18] sm:$0xf0]  ;;  %v475_v41 = vor.u32 %v535_v38, %v474_v37  ;;  %v466_v43 = vld [vmem:[%s690_s27] sm:$0xf]  ;;  %v533_v44 = vld [vmem:[%s690_s27 + $0x4] sm:$0xf0] }
  0x21   : > { %v479_v42 = vor.u32 %v534_v39, %v476_v40  ;;  %v532_v45 = vld [vmem:[%s690_s27 + $0x4] sm:$0xf]  ;;  %v468_v46 = vld [vmem:[%s690_s27 + $0x8] sm:$0xf0]  ;;  %v467_v47 = vor.u32 %v533_v44, %v466_v43  ;;  %v239_v51 = vld [vmem:[%s695_s4] sm:$0x3] }
  0x22   : > { %327 = vmatpush.bf16.msra.mxu0 %v507_v17  ;;  %v221_v48 = vld [vmem:[#allocation2] sm:$0xff]  ;;  %v471_v49 = vor.u32 %v532_v45, %v468_v46  ;;  %v241_v52 = vperm.slane %v239_v51, 0  ;;  %v242_v54 = vperm.slane %v239_v51, 1  ;;  %p528_p8 = scmp.ne.s32.totalorder %s612_s12, 1 }
  0x23   : > { %340 = vmatpush.bf16.msra.mxu1 %v511_v18  ;;  %v222_v50 = vpack.c.bf16 %v221_v48, %v221_v48 }
  0x26   : > { %328 = vmatpush.bf16.msra.mxu0 %v499_v23 }
  0x27   : > { %341 = vmatpush.bf16.msra.mxu1 %v503_v24 }
  0x2a   : > { %329 = vmatpush.bf16.msra.mxu0 %v491_v29 }
  0x2b   : > { %342 = vmatpush.bf16.msra.mxu1 %v495_v30 }
  0x2e   : > { %330 = vmatpush.bf16.msra.mxu0 %v483_v35 }
  0x2f   : > { %343 = vmatpush.bf16.msra.mxu1 %v487_v36 }
  0x32   : > { %331 = vmatpush.bf16.msra.mxu0 %v475_v41 }
  0x33   : > { %344 = vmatpush.bf16.msra.mxu1 %v479_v42 }
  0x36   : > { %332 = vmatpush.bf16.msra.mxu0 %v467_v47 }
  0x37   : > { %345 = vmatpush.bf16.msra.mxu1 %v471_v49 }
  0x39   : > { %333 = vmatmul.bf16.vlgmr.msra.gmra.mxu0 %v222_v50 }
  0x3a   : > { %346 = vmatmul.bf16.vlgmr.msra.gmra.mxu1 %v222_v50 }
  0xb6   : > { %v334_v53 = vpop.f32.mrf.mxu0 }
  0xb7   : > { %v335_v55 = vadd.f32 %v334_v53, %v241_v52  ;;  %v347_v56 = vpop.f32.mrf.mxu1 }
  0xb8   : > { %v348_v58 = vadd.f32 %v347_v56, %v242_v54 }
  0xb9   : > { %v351_v57 = vmul.f32 0.5, %v335_v55 }
  0xba   : > { %v355_v59 = vmax.f32 %v348_v58, 0.0 }
  0xbb   : > { %588 = vtanh.f32 %v351_v57 }
  0xbc   : > { %v356_v0 = vsub.f32 %v355_v59, %v221_v48 }
  0xbe   : > { %v336_v60 = vpop.f32.mrf.mxu0 }
  0xbf   : > { %v349_v61 = vpop.f32.mrf.mxu1 }
  0xc1   : > { %v589_v62 = vpop.eup %588 }
  0xc2   : > { %v353_v63 = vmul.f32 0.5, %v589_v62 }
  0xc4   : > { %v354_v1 = vadd.f32 0.5, %v353_v63 }
  0xc6   : > { %v357_v2 = vmul.f32 %v356_v0, %v354_v1  ;;  %363 = sbr.rel (%p528_p8) target bundleno = 204 (0xcc), region = 40 }
  0xc8   : > { %v358_v3 = vadd.f32 %v357_v2, %v221_v48 }
  0xca   : > { %359 = vst [vmem:[#allocation2] sm:$0xff] %v358_v3 }
  0xcb   : > { %364 = vst [vmem:[%s700_s7] sm:$0xff] %v358_v3 }
  0xcc PF: > { %s13_s16 = sadd.s32 1, %s628_s16   ;;  %s757_s12 = smov %s620_s14 }
  0xcd   : > { %p10_p9 = scmp.ge.s32.totalorder %s13_s16, 6   ;;  %s758_s13 = smov %s624_s15 }
  0xce   : > { %s759_s14 = smov %s762_s17  ;;  %s760_s15 = smov %s766_s18 }
  0xcf   :  { %12 = sbr.rel (!%p10_p9) target bundleno = 3 (0x3), region = 76 }

</bundles_post_ra>
